<compile_context>
chip_gen: v7x
topology: tpu7x:2x2x1
jax: 0.10.0
libtpu: 0.0.40
codegen_flags: <defaults>
</compile_context>

<pallas_src>
import jax
import jax.numpy as jnp
from jax.experimental import pallas as pl
from jax.experimental.pallas import tpu as pltpu


def _awl_kernel(p_ref, l_ref, out_ref):
    # p_ref, l_ref: (1, num) f32 in VMEM.  out_ref: (1,) f32 in SMEM.
    p = p_ref[...]                       # (1, num) params
    l = l_ref[...]                       # (1, num) losses
    p2 = p * p
    inv_p2 = pl.reciprocal(p2, approx=True)     # EUP vrcp (co-issues with VALU)
    terms = 0.5 * l * inv_p2 + jnp.log(1.0 + p2)  # log -> EUP
    out_ref[0] = jnp.sum(terms)          # scalar straight to SMEM output


def _awl_pallas(params_2d, losses_2d):
    num = params_2d.shape[1]
    out = pl.pallas_call(
        _awl_kernel,
        out_shape=jax.ShapeDtypeStruct((1,), jnp.float32),
        in_specs=[
            pl.BlockSpec((1, num), lambda: (0, 0)),
            pl.BlockSpec((1, num), lambda: (0, 0)),
        ],
        out_specs=pl.BlockSpec(memory_space=pltpu.MemorySpace.SMEM),
        cost_estimate=pl.CostEstimate(
            flops=6 * num,
            transcendentals=2 * num,
            bytes_accessed=4 * (2 * num) + 4,
        ),
    )(params_2d, losses_2d)
    return out[0]


@jax.custom_vjp
def _awl(params, losses):
    """params: (num,) f32; losses: (num,) f32.  Returns scalar f32."""
    num = params.shape[0]
    return _awl_pallas(
        params.astype(jnp.float32).reshape(1, num),
        losses.astype(jnp.float32).reshape(1, num),
    )


def _awl_fwd(params, losses):
    return _awl(params, losses), (params, losses)


def _awl_bwd(res, g):
    params, losses = res
    p2 = params * params
    dparams = g * (-losses / (p2 * params) + 2.0 * params / (1.0 + p2))
    dlosses = g * (0.5 / p2)
    return dparams, dlosses


_awl.defvjp(_awl_fwd, _awl_bwd)


def automatic_weighted_loss(params, *losses):
    """Module-style interface: params (num,), losses given as scalars."""
    num = params.shape[0]
    assert len(losses) == num, "number of losses must match number of params"
    losses_arr = jnp.stack([jnp.asarray(l, dtype=jnp.float32) for l in losses])
    return _awl(params, losses_arr)


if __name__ == "__main__":
    num = 2
    # Deterministic parameter init: torch.ones(num) in the reference module.
    params = jnp.ones((num,), dtype=jnp.float32)

    # Deterministic example multi-task losses (scalars) from PRNGKey(0).
    key = jax.random.PRNGKey(0)
    k1, k2 = jax.random.split(key)
    loss1 = jnp.abs(jax.random.normal(k1, (), dtype=jnp.float32)) + 1.0
    loss2 = jnp.abs(jax.random.normal(k2, (), dtype=jnp.float32)) + 2.0

    result = automatic_weighted_loss(params, loss1, loss2)
    result = jax.block_until_ready(result)

    # Pure-JAX reference check (matches the PyTorch forward exactly).
    # Tolerance loosened because the kernel uses the approx EUP reciprocal
    # (~1e-3-class relative error).
    p2 = params ** 2
    ref = jnp.sum(0.5 / p2 * jnp.stack([loss1, loss2]) + jnp.log(1.0 + p2))
    assert jnp.allclose(result, ref, rtol=5e-3, atol=5e-3), (result, ref)

    print("KERNEL_OK")
</pallas_src>

<mosaic_0001>
module attributes {stable_mosaic.version = 11 : i64} {
  func.func @_awl_kernel(%arg0: memref<1x2xf32, #tpu.memory_space<vmem>>, %arg1: memref<1x2xf32, #tpu.memory_space<vmem>>, %arg2: memref<1xf32, #tpu.memory_space<smem>>) attributes {dimension_semantics = [], scalar_prefetch = 0 : i64, scratch_operands = 0 : i64, tpu.core_type = #tpu.core_type<tc>} {
    %c0 = arith.constant 0 : index
    %c0_0 = arith.constant 0 : index
    %0 = vector.load %arg0[%c0, %c0_0] : memref<1x2xf32, #tpu.memory_space<vmem>>, vector<1x2xf32>
    %c0_1 = arith.constant 0 : index
    %c0_2 = arith.constant 0 : index
    %1 = vector.load %arg1[%c0_1, %c0_2] : memref<1x2xf32, #tpu.memory_space<vmem>>, vector<1x2xf32>
    %2 = arith.mulf %0, %0 : vector<1x2xf32>
    %3 = tpu.reciprocal %2 {approx = true} : vector<1x2xf32> -> vector<1x2xf32>
    %cst = arith.constant 5.000000e-01 : f32
    %4 = vector.broadcast %cst : f32 to vector<1x2xf32>
    %5 = arith.mulf %4, %1 : vector<1x2xf32>
    %6 = arith.mulf %5, %3 : vector<1x2xf32>
    %cst_3 = arith.constant 1.000000e+00 : f32
    %7 = vector.broadcast %cst_3 : f32 to vector<1x2xf32>
    %8 = arith.addf %7, %2 : vector<1x2xf32>
    %9 = math.log %8 : vector<1x2xf32>
    %10 = arith.addf %6, %9 : vector<1x2xf32>
    %11 = vector.shape_cast %10 : vector<1x2xf32> to vector<1x1x2xf32>
    %cst_4 = arith.constant dense<0.000000e+00> : vector<1xf32>
    %12 = vector.multi_reduction <add>, %11, %cst_4 [1, 2] : vector<1x1x2xf32> to vector<1xf32>
    %13 = vector.shape_cast %12 : vector<1xf32> to vector<1x1x1xf32>
    %14 = vector.extract %13[0, 0, 0] : f32 from vector<1x1x1xf32>
    %c0_5 = arith.constant 0 : index
    %15 = memref.load %arg2[%c0_5] : memref<1xf32, #tpu.memory_space<smem>>
    memref.store %14, %arg2[%c0_5] : memref<1xf32, #tpu.memory_space<smem>>
    return
  }
}

</mosaic_0001>

<bundles_post_ra>
// kernel: tpu_custom_call.1
= control target key start
LH: loop header
LB: loop body
LE: loop exit
PB: predicated region body
PF: predicated region fallthrough
CT: control target
= control target key end

     0   :  { %7 = vsyncpa [#allocation3], 0  ;;  %s149_s0 = inlined_call_operand.hbm [shape: f32[1,2], index: 0, kind: input, shape index: {}]   ;;  %s150_s1 = inlined_call_operand.vmem [shape: f32[1,2], index: 1, kind: input, shape index: {}]   ;;  %s151_s2 = inlined_call_operand.hbm [shape: f32[1], index: 2, kind: output, shape index: {}]  }
   0x1   :  { %8 = vsyncpa [#allocation4], 0  ;;  %s105_s9 = smov [#allocation2]   ;;  %s69_s13 = scalar_lea.hbm %s149_s0, 16 }
   0x2   :  { %s15_s10 = sshll.u32 %s105_s9, 4  ;;  %p70_p0 = scmp.ne.s32.totalorder %s149_s0, %s69_s13  ;;  %s16_s10 = int_to_ptr.vmem [resolvable:$true] %s15_s10 }
   0x3   :  { %p73_p1 = scmp.lt.u32.totalorder %s69_s13, %s149_s0 }
   0x5   :  { %p75_p2 = pnand %p73_p1, %p70_p0 }
   0x7   :  { %78 = shalt.err (!%p75_p2)
}
   0x8   :  { %s79_s18 = scalar_lea.vmem %s16_s10, 16  ;;  %s83_s19 = scalar_lea.vmem %s16_s10, 32 }
   0x9   :  { %p80_p3 = scmp.ne.s32.totalorder %s16_s10, %s79_s18  ;;  %p84_p4 = scmp.lt.s32.totalorder %s16_s10, %s16_s10 }
   0xa   :  { %p85_p5 = scmp.lt.s32.totalorder %s83_s19, %s79_s18 }
   0xc   :  { %p86_p6 = por %p85_p5, %p84_p4 }
   0xe   :  { %p87_p7 = pnand %p86_p6, %p80_p3 }
  0x10   :  { %90 = shalt.err (!%p87_p7)
}
  0x11   :  { %18 = dma.hbm_to_vmem [thread:$0]  %s149_s0, 16, %s16_s10, [#allocation3]  }
  0x12   :  { %101 = dma.done.wait [#allocation3], 16  }
  0x13   :  { %102 = vsyncadd [#allocation3], 4294967280  ;;  %v24_v0 = vld [vmem:[#allocation2] sm:$0x1]  ;;  %vm34_vm0 = vcmask 8192   ;;  %s91_s25 = scalar_lea.hbm %s151_s2, 16 }
  0x14   :  { %v26_v1 = vmul.f32 %v24_v0, %v24_v0  ;;  %v25_v3 = vld [vmem:[%s150_s1] sm:$0x1]  ;;  %p92_p8 = scmp.ne.s32.totalorder %s151_s2, %s91_s25  ;;  %p95_p9 = scmp.lt.u32.totalorder %s91_s25, %s151_s2 }
  0x15   :  { %v28_v4 = vmul.f32 0.5, %v25_v3 }
  0x16   :  { %65 = vrcp.f32 %v26_v1  ;;  %v30_v2 = vadd.f32 1.0, %v26_v1  ;;  %p97_p10 = pnand %p95_p9, %p92_p8 }
  0x18   :  { %67 = vlog2.f32 %v30_v2 }
  0x20   :  { %v66_v5 = vpop.eup %65 }
  0x21   :  { %v29_v6 = vmul.f32 %v66_v5, %v28_v4 }
  0x22   :  { %v68_v7 = vpop.eup %67 }
  0x23   :  { %v32_v8 = vmul.f32 0.6931472, %v68_v7 }
  0x25   :  { %v33_v9 = vadd.f32 %v32_v8, %v29_v6 }
  0x27   :  { %v35_v10 = vsel %vm34_vm0, %v33_v9, 0.0 }
  0x28   :  { %36 = vadd.xlane.f32.xlu0 %v35_v10 }
  0xb5   :  { %v37_v11 = vpop.xlane.xlu0 %36 }
  0xb6   :  { %v38_v12 = vrot.slane %v37_v11, 4 }
  0xb8   :  { %v39_v13 = vadd.f32 %v38_v12, %v37_v11 }
  0xba   :  { %v40_v14 = vrot.slane %v39_v13, 2 }
  0xbc   :  { %v41_v15 = vadd.f32 %v40_v14, %v39_v13 }
  0xbe   :  { %v42_v16 = vrot.slane %v41_v15, 1 }
  0xc0   :  { %v43_v17 = vadd.f32 %v42_v16, %v41_v15 }
  0xc2   :  { %61 = vpush %v43_v17 }
  0xf3   :  { %s62_s0 = spop %61 }
  0xf4   :  { %46 = sst [smem:[#allocation5]] %s62_s0 }
  0xf5   :  { %100 = shalt.err (!%p97_p10)
}
  0xf6   :  { %s106_s30 = smov [#allocation5]  }
  0xf7   :  { %54 = dma.smem_to_hbm %s106_s30, 16, %s151_s2, [#allocation4]  }
  0xf8   :  { %103 = dma.done.wait [#allocation4], 16  }
  0xf9   :  { %104 = vsyncadd [#allocation4], 4294967280 }
  0xfa   :  { %58 = sfence }
  0xfb   :  { %59 = vsyncpa [#allocation3], 1 }
  0xfc   :  { %60 = vsyncpa [#allocation4], 1 }

</bundles_post_ra>
